<compile_context>
chip_gen: v5e
topology: v5e:2x2
jax: 0.10.0
libtpu: 0.0.40
codegen_flags: <defaults>
</compile_context>

<pallas_src>
import functools

import jax
import jax.numpy as jnp
from jax.experimental import pallas as pl
from jax.experimental.pallas import tpu as pltpu


_MAX_SPATIAL_TILE = 2048            # lane chunk of H*W (multiple of 128)
_TARGET_BLOCK_BYTES = 4 * 1024 * 1024  # per input block (Pallas double-buffers it)


def _concat_pool_kernel(x_ref, out_ref, sum_sc, max_sc, *,
                        hw, thw, needs_mask, inv_hw):
    # x_ref:   (R, THW)  rows = flattened (n, c), lanes = spatial chunk
    # out_ref: (R, 2)    col 0 = avg, col 1 = max
    # sum_sc / max_sc: (R, 1) f32 accumulators, persistent across the k axis
    k = pl.program_id(1)

    @pl.when(k == 0)
    def _init():
        sum_sc[...] = jnp.zeros_like(sum_sc)
        max_sc[...] = jnp.full_like(max_sc, -jnp.inf)

    x = x_ref[...].astype(jnp.float32)               # widen once; reused by both paths

    if needs_mask:
        # Last spatial chunk may be ragged: mask out-of-range lanes.
        valid = hw - k * thw                         # >= 1 by construction
        lane = jax.lax.broadcasted_iota(jnp.int32, x.shape, 1)
        in_bounds = lane < valid
        x_sum = jnp.where(in_bounds, x, 0.0)
        x_max = jnp.where(in_bounds, x, -jnp.inf)
    else:
        x_sum = x
        x_max = x

    sum_sc[...] += jnp.sum(x_sum, axis=-1, keepdims=True)
    max_sc[...] = jnp.maximum(max_sc[...], jnp.max(x_max, axis=-1, keepdims=True))

    @pl.when(k == pl.num_programs(1) - 1)
    def _finish():
        out_ref[:, 0:1] = (sum_sc[...] * inv_hw).astype(out_ref.dtype)
        out_ref[:, 1:2] = max_sc[...].astype(out_ref.dtype)


def adaptive_concat_pool2d(x):
    """x: (N, C, H, W) -> (N, 2*C, 1, 1), same dtype as x.

    Matches torch.cat([AdaptiveAvgPool2d((1,1))(x),
                       AdaptiveMaxPool2d((1,1))(x)], dim=1).
    """
    N, C, H, W = x.shape
    NC = N * C
    HW = H * W
    itemsize = x.dtype.itemsize

    x_flat = x.reshape(NC, HW)

    # Spatial (lane) tile: whole H*W when it fits, else 128-aligned chunks.
    thw = HW if HW <= _MAX_SPATIAL_TILE else _MAX_SPATIAL_TILE
    needs_mask = (HW % thw) != 0

    # Row (sublane) tile: multiple of 8, sized so one input block is ~4 MiB.
    r = _TARGET_BLOCK_BYTES // (thw * itemsize)
    r = max(8, min(1024, (r // 8) * 8))
    if r >= NC:
        r = NC  # full row extent -> always a legal block shape

    grid = (pl.cdiv(NC, r), pl.cdiv(HW, thw))

    kernel = functools.partial(
        _concat_pool_kernel,
        hw=HW, thw=thw, needs_mask=needs_mask, inv_hw=1.0 / HW)

    pooled = pl.pallas_call(
        kernel,
        out_shape=jax.ShapeDtypeStruct((NC, 2), x.dtype),
        grid_spec=pltpu.PrefetchScalarGridSpec(
            num_scalar_prefetch=0,
            grid=grid,
            in_specs=[pl.BlockSpec((r, thw), lambda i, k: (i, k))],
            out_specs=pl.BlockSpec((r, 2), lambda i, k: (i, 0)),
            scratch_shapes=[
                pltpu.VMEM((r, 1), jnp.float32),   # running sum
                pltpu.VMEM((r, 1), jnp.float32),   # running max
            ],
        ),
        compiler_params=pltpu.CompilerParams(
            dimension_semantics=("parallel", "arbitrary"),
        ),
        cost_estimate=pl.CostEstimate(
            flops=2 * NC * HW,
            transcendentals=0,
            bytes_accessed=NC * HW * itemsize + NC * 2 * itemsize,
        ),
    )(x_flat)

    # (NC, 2) -> (N, 2, C) -> (N, 2C, 1, 1): [avg channels | max channels]
    out = pooled.reshape(N, C, 2).transpose(0, 2, 1).reshape(N, 2 * C, 1, 1)
    return out


if __name__ == "__main__":
    key = jax.random.PRNGKey(0)
    # Small NCHW input consistent with the module's forward.
    x = jax.random.normal(key, (2, 4, 16, 16), dtype=jnp.float32)

    out = jax.block_until_ready(adaptive_concat_pool2d(x))

    ref_avg = jnp.mean(x, axis=(2, 3), keepdims=True)
    ref_max = jnp.max(x, axis=(2, 3), keepdims=True)
    ref = jnp.concatenate([ref_avg, ref_max], axis=1)
    assert out.shape == (2, 8, 1, 1), out.shape
    assert jnp.allclose(out, ref, atol=1e-5, rtol=1e-5), "mismatch vs reference"

    # Exercise the chunked-spatial + ragged-row-tile path.
    key2 = jax.random.PRNGKey(1)
    x2 = jax.random.normal(key2, (2, 300, 45, 51), dtype=jnp.float32)  # HW=2295, NC=600
    out2 = jax.block_until_ready(adaptive_concat_pool2d(x2))
    ref2 = jnp.concatenate(
        [jnp.mean(x2, axis=(2, 3), keepdims=True),
         jnp.max(x2, axis=(2, 3), keepdims=True)], axis=1)
    assert out2.shape == (2, 600, 1, 1), out2.shape
    assert jnp.allclose(out2, ref2, atol=1e-4, rtol=1e-5), "mismatch vs reference (chunked)"

    print("KERNEL_OK")
</pallas_src>

<mosaic_0001>
module attributes {stable_mosaic.version = 11 : i64} {
  func.func @_concat_pool_kernel(%arg0: i32, %arg1: i32, %arg2: memref<8x256xf32, #tpu.memory_space<vmem>>, %arg3: memref<8x2xf32, #tpu.memory_space<vmem>>, %arg4: memref<8x1xf32, #tpu.memory_space<vmem>>, %arg5: memref<8x1xf32, #tpu.memory_space<vmem>>) attributes {dimension_semantics = [#tpu.dimension_semantics<parallel>, #tpu.dimension_semantics<arbitrary>], iteration_bounds = array<i64: 1, 1>, scalar_prefetch = 0 : i64, scratch_operands = 2 : i64, tpu.core_type = #tpu.core_type<tc>, window_params = [{transform_indices = @transform_0, window_bounds = array<i64: 8, 256>}, {transform_indices = @transform_1, window_bounds = array<i64: 8, 2>}]} {
    %c0_i32 = arith.constant 0 : i32
    %0 = arith.cmpi eq, %arg1, %c0_i32 : i32
    %1 = arith.extui %0 : i1 to i32
    %c0_i32_0 = arith.constant 0 : i32
    %2 = arith.cmpi ne, %1, %c0_i32_0 : i32
    scf.if %2 {
      %cst_13 = arith.constant 0.000000e+00 : f32
      %17 = vector.broadcast %cst_13 : f32 to vector<8x1xf32>
      %c0_14 = arith.constant 0 : index
      %c0_15 = arith.constant 0 : index
      %18 = vector.load %arg4[%c0_14, %c0_15] : memref<8x1xf32, #tpu.memory_space<vmem>>, vector<8x1xf32>
      tpu.vector_store %arg4[%c0_14, %c0_15], %17 {strides = array<i32>} : memref<8x1xf32, #tpu.memory_space<vmem>>, vector<8x1xf32>,
      %cst_16 = arith.constant 0xFF800000 : f32
      %19 = vector.broadcast %cst_16 : f32 to vector<8x1xf32>
      %c0_17 = arith.constant 0 : index
      %c0_18 = arith.constant 0 : index
      %20 = vector.load %arg5[%c0_17, %c0_18] : memref<8x1xf32, #tpu.memory_space<vmem>>, vector<8x1xf32>
      tpu.vector_store %arg5[%c0_17, %c0_18], %19 {strides = array<i32>} : memref<8x1xf32, #tpu.memory_space<vmem>>, vector<8x1xf32>,
    } else {
    }
    %c0 = arith.constant 0 : index
    %c0_1 = arith.constant 0 : index
    %3 = vector.load %arg2[%c0, %c0_1] : memref<8x256xf32, #tpu.memory_space<vmem>>, vector<8x256xf32>
    %c0_2 = arith.constant 0 : index
    %c0_3 = arith.constant 0 : index
    %4 = vector.load %arg4[%c0_2, %c0_3] : memref<8x1xf32, #tpu.memory_space<vmem>>, vector<8x1xf32>
    %cst = arith.constant dense<0.000000e+00> : vector<8xf32>
    %5 = vector.multi_reduction <add>, %3, %cst [1] : vector<8x256xf32> to vector<8xf32>
    %6 = vector.shape_cast %5 : vector<8xf32> to vector<8x1xf32>
    %7 = arith.addf %4, %6 : vector<8x1xf32>
    %c0_4 = arith.constant 0 : index
    %c0_5 = arith.constant 0 : index
    %8 = vector.load %arg4[%c0_4, %c0_5] : memref<8x1xf32, #tpu.memory_space<vmem>>, vector<8x1xf32>
    tpu.vector_store %arg4[%c0_4, %c0_5], %7 {strides = array<i32>} : memref<8x1xf32, #tpu.memory_space<vmem>>, vector<8x1xf32>,
    %c0_6 = arith.constant 0 : index
    %c0_7 = arith.constant 0 : index
    %9 = vector.load %arg5[%c0_6, %c0_7] : memref<8x1xf32, #tpu.memory_space<vmem>>, vector<8x1xf32>
    %cst_8 = arith.constant dense<0xFF800000> : vector<8xf32>
    %10 = vector.multi_reduction <maximumf>, %3, %cst_8 [1] : vector<8x256xf32> to vector<8xf32>
    %11 = vector.shape_cast %10 : vector<8xf32> to vector<8x1xf32>
    %12 = arith.maximumf %9, %11 : vector<8x1xf32>
    %c0_9 = arith.constant 0 : index
    %c0_10 = arith.constant 0 : index
    %13 = vector.load %arg5[%c0_9, %c0_10] : memref<8x1xf32, #tpu.memory_space<vmem>>, vector<8x1xf32>
    tpu.vector_store %arg5[%c0_9, %c0_10], %12 {strides = array<i32>} : memref<8x1xf32, #tpu.memory_space<vmem>>, vector<8x1xf32>,
    %c0_i32_11 = arith.constant 0 : i32
    %14 = arith.cmpi eq, %arg1, %c0_i32_11 : i32
    %15 = arith.extui %14 : i1 to i32
    %c0_i32_12 = arith.constant 0 : i32
    %16 = arith.cmpi ne, %15, %c0_i32_12 : i32
    scf.if %16 {
      %c0_13 = arith.constant 0 : index
      %c0_14 = arith.constant 0 : index
      %17 = vector.load %arg4[%c0_13, %c0_14] : memref<8x1xf32, #tpu.memory_space<vmem>>, vector<8x1xf32>
      %cst_15 = arith.constant 3.906250e-03 : f32
      %18 = vector.broadcast %cst_15 : f32 to vector<8x1xf32>
      %19 = arith.mulf %17, %18 : vector<8x1xf32>
      %c0_16 = arith.constant 0 : index
      %c0_17 = arith.constant 0 : index
      %20 = vector.load %arg3[%c0_16, %c0_17] : memref<8x2xf32, #tpu.memory_space<vmem>>, vector<8x1xf32>
      tpu.vector_store %arg3[%c0_16, %c0_17], %19 {strides = array<i32>} : memref<8x2xf32, #tpu.memory_space<vmem>>, vector<8x1xf32>,
      %c0_18 = arith.constant 0 : index
      %c0_19 = arith.constant 0 : index
      %21 = vector.load %arg5[%c0_18, %c0_19] : memref<8x1xf32, #tpu.memory_space<vmem>>, vector<8x1xf32>
      %c0_20 = arith.constant 0 : index
      %c1 = arith.constant 1 : index
      %22 = vector.load %arg3[%c0_20, %c1] : memref<8x2xf32, #tpu.memory_space<vmem>>, vector<8x1xf32>
      tpu.vector_store %arg3[%c0_20, %c1], %21 {strides = array<i32>} : memref<8x2xf32, #tpu.memory_space<vmem>>, vector<8x1xf32>,
    } else {
    }
    return
  }
  func.func @transform_0(%arg0: i32, %arg1: i32) -> (i32, i32) {
    %c0_i32 = arith.constant 0 : i32
    return %arg0, %arg1 : i32, i32
  }
  func.func @transform_1(%arg0: i32, %arg1: i32) -> (i32, i32) {
    %c0_i32 = arith.constant 0 : i32
    %c0_i32_0 = arith.constant 0 : i32
    return %arg0, %c0_i32 : i32, i32
  }
}

</mosaic_0001>

<bundles_post_ra>
// kernel: tpu_custom_call.1
= control target key start
LH: loop header
LB: loop body
LE: loop exit
PB: predicated region body
PF: predicated region fallthrough
CT: control target
= control target key end

     0   :  { %6 = vsyncpa [#allocation5], 0  ;;  %s92_s9 = smov [#allocation4]   ;;  %s120_s0 = inlined_call_operand.hbm [shape: f32[8,256], index: 0, kind: input, shape index: {}]   ;;  %s121_s1 = inlined_call_operand.vmem [shape: f32[8,2], index: 1, kind: output, shape index: {}]  }
   0x1   :  { %s12_s8 = sshll.u32 %s120_s0, 4  ;;  %s14_s10 = sshll.u32 %s92_s9, 4  ;;  %s13_s8 = int_to_ptr.hbm [resolvable:$true] %s12_s8  ;;  %s15_s10 = int_to_ptr.vmem [resolvable:$true] %s14_s10 }
   0x2   :  { %17 = dma.hbm_to_vmem [thread:$0]  %s13_s8, 256, %s15_s10, [#allocation5]  }
   0x3   :  { %90 = dma.done.wait [#allocation5], 256  }
   0x4   :  { %91 = vsyncadd [#allocation5], 4294967040  ;;  %vm26_vm0 = vcmask 7168   ;;  %v93_v0 = vmov -inf   ;;  %v29_v1 = vld [vmem:[#allocation4] sm:$0xff]  ;;  %v30_v2 = vld [vmem:[#allocation4 + $0x8] sm:$0xff] }
   0x5   :  { %28 = vst.msk [vmem:[#allocation3] sm:$0xff] %vm26_vm0, %v93_v0  ;;  %v39_v3 = vmax.f32 %v29_v1, %v30_v2  ;;  %v32_v4 = vadd.f32 %v30_v2, %v29_v1  ;;  %v94_v5 = vmov 0.0   ;;  %s95_s0 = smov 1   ;;  %vm55_vm1 = vcmask 15368  }
   0x6   :  { %27 = vst.msk [vmem:[#allocation2] sm:$0xff] %vm26_vm0, %v94_v5 }
   0x7   :  { %40 = vmax.xlane.f32.xlu0 %v39_v3 }
   0xc   :  { %v38_v6 = vld [vmem:[#allocation3] sm:$0xff] }
   0xd   :  { %v31_v9 = vld [vmem:[#allocation2] sm:$0xff] }
   0xf   :  { %33 = vadd.xlane.f32.xlu0 %v32_v4 }
  0x7a   :  { %v41_v7 = vpop.xlane.xlu0 %40 }
  0x7b   :  { %v42_v8 = vmax.f32 %v38_v6, %v41_v7 }
  0x7d   :  { %43 = vst.msk [vmem:[#allocation3] sm:$0xff] %vm26_vm0, %v42_v8 }
  0x82   :  { %v34_v10 = vpop.xlane.xlu0 %33 }
  0x83   :  { %v35_v11 = vadd.f32 %v34_v10, %v31_v9 }
  0x84   :  { %v50_v12 = vld [vmem:[#allocation3] sm:$0xff] }
  0x85   :  { %52 = vrot.lane.b32.xlu1 %v50_v12, %s95_s0  ;;  %37 = vst.msk [vmem:[#allocation2] sm:$0xff] %vm26_vm0, %v35_v11 }
  0x8c   :  { %v47_v13 = vld [vmem:[#allocation2] sm:$0xff] }
  0x8d   :  { %v48_v14 = vmul.f32 0.00390625, %v47_v13 }
  0x8f   :  { %49 = vst.msk [vmem:[%s121_s1] sm:$0xff] %vm26_vm0, %v48_v14 }
  0xf7   :  { %v53_v15 = vpop.permute.xlu1 %52 }
  0xf8   :  { %56 = vst.msk [vmem:[%s121_s1] sm:$0xff] %vm55_vm1, %v53_v15 }
  0xf9   :  { %61 = vsyncpa [#allocation5], 1 }

</bundles_post_ra>
